<compile_context>
chip_gen: v7x
topology: tpu7x:2x2x1
jax: 0.10.0
libtpu: 0.0.40
codegen_flags: <defaults>
</compile_context>

<pallas_src>
import jax
import jax.numpy as jnp
from jax.experimental import pallas as pl
from jax.experimental.pallas import tpu as pltpu


NEG_SLOPE = 0.01  # torch.nn.LeakyReLU default negative_slope
LANE = 128


def _round_up(x, m):
    return ((x + m - 1) // m) * m


def mlp_encoder_kernel(sig_ref, dft_ref,
                       w1s_ref, w1d_ref, b1_ref,
                       w2_ref, b2_ref, wl_ref, bl_ref, o_ref):
    """3-layer MLP hot path: matmuls on the MXU, LeakyReLU on the VPU.

    Layer 1 is a split-K matmul (signal rows / DFT-feature rows of W1), which
    replaces the HBM concat of the feature vector.
    """
    h = jnp.dot(sig_ref[...], w1s_ref[...], preferred_element_type=jnp.float32)
    h = h + jnp.dot(dft_ref[...], w1d_ref[...], preferred_element_type=jnp.float32)
    h = h + b1_ref[...]
    h = jnp.maximum(h, NEG_SLOPE * h)                                   # LeakyReLU

    h = jnp.dot(h, w2_ref[...], preferred_element_type=jnp.float32) + b2_ref[...]
    h = jnp.maximum(h, NEG_SLOPE * h)                                   # LeakyReLU

    out = jnp.dot(h, wl_ref[...], preferred_element_type=jnp.float32) + bl_ref[...]
    o_ref[...] = out.astype(o_ref.dtype)


def mlp_encoder_forward(encoder_input, params, *, tile_n=1024):
    """encoder_input: [N, L, 1] float32 ; returns [N, decoder_hidden_dim]."""
    N, L, _ = encoder_input.shape
    sig = encoder_input[:, :, 0].astype(jnp.float32)                    # [N, L]

    # TODO(synk): complex rfft / abs / angle have no Pallas TPU equivalent
    # (Mosaic has no complex dtype) — computed in plain JAX as glue.
    fft_result = jnp.fft.rfft(sig, axis=1, norm="forward")              # [N, F]
    F = fft_result.shape[1]
    dft = jnp.concatenate(
        [jnp.abs(fft_result), jnp.angle(fft_result)], axis=1
    ).astype(jnp.float32)                                               # [N, 2F]

    w1, b1, w2, b2, wl, bl = params
    D = w1.shape[0]          # = L + 2*F (signal_plus_dft_dim)
    HID = w1.shape[1]        # 100
    H = wl.shape[1]          # decoder_hidden_dim

    HID_P = _round_up(HID, LANE)
    D_P = _round_up(D, LANE)
    H_P = _round_up(H, LANE)

    # Split W1 along K (signal rows / DFT rows) and zero-pad lane dims once;
    # weights are tiny, so this is negligible and keeps padded lanes at zero.
    w1_sig = jnp.pad(w1[:L], ((0, 0), (0, HID_P - HID)))                # [L, HID_P]
    w1_dft = jnp.pad(w1[L:], ((0, 0), (0, HID_P - HID)))                # [2F, HID_P]
    b1_p = jnp.pad(b1, (0, HID_P - HID)).reshape(1, HID_P)
    w2_p = jnp.pad(w2, ((0, HID_P - HID), (0, D_P - D)))
    b2_p = jnp.pad(b2, (0, D_P - D)).reshape(1, D_P)
    wl_p = jnp.pad(wl, ((0, D_P - D), (0, H_P - H)))
    bl_p = jnp.pad(bl, (0, H_P - H)).reshape(1, H_P)

    # Batch tiling: sublane-aligned tile, batch padded to whole tiles.
    tile_n = _round_up(min(tile_n, _round_up(N, 8)), 8)
    N_P = _round_up(N, tile_n)
    if N_P != N:
        pad = ((0, N_P - N), (0, 0))
        sig = jnp.pad(sig, pad)
        dft = jnp.pad(dft, pad)

    grid = (N_P // tile_n,)

    def act_spec(cols):
        return pl.BlockSpec((tile_n, cols), lambda i: (i, 0))

    def fixed_spec(shape):
        # Constant block index -> weights/biases stay VMEM-resident across grid.
        return pl.BlockSpec(shape, lambda i: (0, 0))

    flops = 2 * N_P * ((L + 2 * F) * HID_P + HID_P * D_P + D_P * H_P)
    bytes_accessed = 4 * (
        N_P * (L + 2 * F + H_P)
        + (L + 2 * F) * HID_P + HID_P
        + HID_P * D_P + D_P
        + D_P * H_P + H_P
    )

    out = pl.pallas_call(
        mlp_encoder_kernel,
        out_shape=jax.ShapeDtypeStruct((N_P, H_P), jnp.float32),
        grid=grid,
        in_specs=[
            act_spec(L), act_spec(2 * F),
            fixed_spec(w1_sig.shape), fixed_spec(w1_dft.shape),
            fixed_spec(b1_p.shape),
            fixed_spec(w2_p.shape), fixed_spec(b2_p.shape),
            fixed_spec(wl_p.shape), fixed_spec(bl_p.shape),
        ],
        out_specs=pl.BlockSpec((tile_n, H_P), lambda i: (i, 0)),
        compiler_params=pltpu.CompilerParams(
            dimension_semantics=("parallel",),
        ),
        cost_estimate=pl.CostEstimate(
            flops=flops, transcendentals=0, bytes_accessed=bytes_accessed),
    )(sig, dft, w1_sig, w1_dft, b1_p, w2_p, b2_p, wl_p, bl_p)

    return out[:N, :H]


def init_params(key, signal_plus_dft_dim, decoder_hidden_dim):
    """Deterministic PyTorch-style (uniform +-1/sqrt(fan_in)) initialization."""

    def linear_init(k, fan_in, fan_out):
        kw, kb = jax.random.split(k)
        bound = 1.0 / float(fan_in) ** 0.5
        # Stored as [in, out] (transposed vs. torch's [out, in]) for y = x @ W + b.
        w = jax.random.uniform(kw, (fan_in, fan_out), jnp.float32, -bound, bound)
        b = jax.random.uniform(kb, (fan_out,), jnp.float32, -bound, bound)
        return w, b

    k1, k2, k3 = jax.random.split(key, 3)
    w1, b1 = linear_init(k1, signal_plus_dft_dim, 100)                  # linear_1
    w2, b2 = linear_init(k2, 100, signal_plus_dft_dim)                  # linear_2
    wl, bl = linear_init(k3, signal_plus_dft_dim, decoder_hidden_dim)   # linear_last
    return w1, b1, w2, b2, wl, bl


def _reference_forward(encoder_input, params):
    """Pure-JAX reference mirroring the PyTorch forward, for validation."""
    sig = encoder_input[:, :, 0]
    fft_result = jnp.fft.rfft(sig, axis=1, norm="forward")
    feat = jnp.concatenate([sig, jnp.abs(fft_result), jnp.angle(fft_result)], axis=1)
    w1, b1, w2, b2, wl, bl = params

    def leaky(v):
        return jnp.where(v >= 0, v, NEG_SLOPE * v)

    h = leaky(feat @ w1 + b1)
    h = leaky(h @ w2 + b2)
    return h @ wl + bl


if __name__ == "__main__":
    L = 16
    D = L + 2 * (L // 2 + 1)        # signal_plus_dft_dim = 34
    H = 32                          # decoder_hidden_dim

    key = jax.random.PRNGKey(0)
    kx, kp, kx2 = jax.random.split(key, 3)
    params = init_params(kp, D, H)

    # Small shape (single grid step, batch padded 2 -> 8 sublanes).
    N = 2
    encoder_input = jax.random.normal(kx, (N, L, 1), dtype=jnp.float32)
    out = jax.block_until_ready(mlp_encoder_forward(encoder_input, params))
    assert out.shape == (N, H), out.shape
    ref = _reference_forward(encoder_input, params)
    assert jnp.allclose(out, ref, rtol=1e-4, atol=1e-4), float(
        jnp.max(jnp.abs(out - ref))
    )

    # Larger batch exercising a multi-step grid (3 tiles of 128 rows, padded).
    N2 = 300
    encoder_input2 = jax.random.normal(kx2, (N2, L, 1), dtype=jnp.float32)
    out2 = jax.block_until_ready(
        mlp_encoder_forward(encoder_input2, params, tile_n=128)
    )
    assert out2.shape == (N2, H), out2.shape
    ref2 = _reference_forward(encoder_input2, params)
    assert jnp.allclose(out2, ref2, rtol=1e-4, atol=1e-4), float(
        jnp.max(jnp.abs(out2 - ref2))
    )

    print("KERNEL_OK")
</pallas_src>

<mosaic_0001>
module attributes {stable_mosaic.version = 11 : i64} {
  func.func @mlp_encoder_kernel(%arg0: i32, %arg1: memref<8x16xf32, #tpu.memory_space<vmem>>, %arg2: memref<8x18xf32, #tpu.memory_space<vmem>>, %arg3: memref<16x128xf32, #tpu.memory_space<vmem>>, %arg4: memref<18x128xf32, #tpu.memory_space<vmem>>, %arg5: memref<1x128xf32, #tpu.memory_space<vmem>>, %arg6: memref<128x128xf32, #tpu.memory_space<vmem>>, %arg7: memref<1x128xf32, #tpu.memory_space<vmem>>, %arg8: memref<128x128xf32, #tpu.memory_space<vmem>>, %arg9: memref<1x128xf32, #tpu.memory_space<vmem>>, %arg10: memref<8x128xf32, #tpu.memory_space<vmem>>) attributes {dimension_semantics = [#tpu.dimension_semantics<parallel>], iteration_bounds = array<i64: 1>, scalar_prefetch = 0 : i64, scratch_operands = 0 : i64, tpu.core_type = #tpu.core_type<tc>, window_params = [{transform_indices = @transform_0, window_bounds = array<i64: 8, 16>}, {transform_indices = @transform_1, window_bounds = array<i64: 8, 18>}, {pipeline_mode = #tpu.pipeline_mode<synchronous>, transform_indices = @transform_2, window_bounds = array<i64: 16, 128>}, {pipeline_mode = #tpu.pipeline_mode<synchronous>, transform_indices = @transform_3, window_bounds = array<i64: 18, 128>}, {pipeline_mode = #tpu.pipeline_mode<synchronous>, transform_indices = @transform_4, window_bounds = array<i64: 1, 128>}, {pipeline_mode = #tpu.pipeline_mode<synchronous>, transform_indices = @transform_5, window_bounds = array<i64: 128, 128>}, {pipeline_mode = #tpu.pipeline_mode<synchronous>, transform_indices = @transform_6, window_bounds = array<i64: 1, 128>}, {pipeline_mode = #tpu.pipeline_mode<synchronous>, transform_indices = @transform_7, window_bounds = array<i64: 128, 128>}, {pipeline_mode = #tpu.pipeline_mode<synchronous>, transform_indices = @transform_8, window_bounds = array<i64: 1, 128>}, {transform_indices = @transform_9, window_bounds = array<i64: 8, 128>}]} {
    %c0 = arith.constant 0 : index
    %c0_0 = arith.constant 0 : index
    %0 = vector.load %arg1[%c0, %c0_0] : memref<8x16xf32, #tpu.memory_space<vmem>>, vector<8x16xf32>
    %c0_1 = arith.constant 0 : index
    %c0_2 = arith.constant 0 : index
    %1 = vector.load %arg3[%c0_1, %c0_2] : memref<16x128xf32, #tpu.memory_space<vmem>>, vector<16x128xf32>
    %cst = arith.constant dense<0.000000e+00> : vector<8x128xf32>
    %2 = tpu.matmul %0, %1, %cst {dimension_numbers = #tpu.dot_dimension_numbers<[1], [0], [0], [1], [0, 0, 1, 1], [], []>} : vector<8x16xf32>, vector<16x128xf32>, vector<8x128xf32> -> vector<8x128xf32>
    %c0_3 = arith.constant 0 : index
    %c0_4 = arith.constant 0 : index
    %3 = vector.load %arg2[%c0_3, %c0_4] : memref<8x18xf32, #tpu.memory_space<vmem>>, vector<8x18xf32>
    %c0_5 = arith.constant 0 : index
    %c0_6 = arith.constant 0 : index
    %4 = vector.load %arg4[%c0_5, %c0_6] : memref<18x128xf32, #tpu.memory_space<vmem>>, vector<18x128xf32>
    %cst_7 = arith.constant dense<0.000000e+00> : vector<8x128xf32>
    %5 = tpu.matmul %3, %4, %cst_7 {dimension_numbers = #tpu.dot_dimension_numbers<[1], [0], [0], [1], [0, 0, 1, 1], [], []>} : vector<8x18xf32>, vector<18x128xf32>, vector<8x128xf32> -> vector<8x128xf32>
    %6 = arith.addf %2, %5 : vector<8x128xf32>
    %c0_8 = arith.constant 0 : index
    %c0_9 = arith.constant 0 : index
    %7 = vector.load %arg5[%c0_8, %c0_9] : memref<1x128xf32, #tpu.memory_space<vmem>>, vector<1x128xf32>
    %8 = vector.broadcast %7 : vector<1x128xf32> to vector<8x128xf32>
    %9 = arith.addf %6, %8 : vector<8x128xf32>
    %cst_10 = arith.constant 0.00999999977 : f32
    %10 = vector.broadcast %cst_10 : f32 to vector<8x128xf32>
    %11 = arith.mulf %10, %9 : vector<8x128xf32>
    %12 = arith.maximumf %9, %11 : vector<8x128xf32>
    %c0_11 = arith.constant 0 : index
    %c0_12 = arith.constant 0 : index
    %13 = vector.load %arg6[%c0_11, %c0_12] : memref<128x128xf32, #tpu.memory_space<vmem>>, vector<128x128xf32>
    %cst_13 = arith.constant dense<0.000000e+00> : vector<8x128xf32>
    %14 = tpu.matmul %12, %13, %cst_13 {dimension_numbers = #tpu.dot_dimension_numbers<[1], [0], [0], [1], [0, 0, 1, 1], [], []>} : vector<8x128xf32>, vector<128x128xf32>, vector<8x128xf32> -> vector<8x128xf32>
    %c0_14 = arith.constant 0 : index
    %c0_15 = arith.constant 0 : index
    %15 = vector.load %arg7[%c0_14, %c0_15] : memref<1x128xf32, #tpu.memory_space<vmem>>, vector<1x128xf32>
    %16 = vector.broadcast %15 : vector<1x128xf32> to vector<8x128xf32>
    %17 = arith.addf %14, %16 : vector<8x128xf32>
    %cst_16 = arith.constant 0.00999999977 : f32
    %18 = vector.broadcast %cst_16 : f32 to vector<8x128xf32>
    %19 = arith.mulf %18, %17 : vector<8x128xf32>
    %20 = arith.maximumf %17, %19 : vector<8x128xf32>
    %c0_17 = arith.constant 0 : index
    %c0_18 = arith.constant 0 : index
    %21 = vector.load %arg8[%c0_17, %c0_18] : memref<128x128xf32, #tpu.memory_space<vmem>>, vector<128x128xf32>
    %cst_19 = arith.constant dense<0.000000e+00> : vector<8x128xf32>
    %22 = tpu.matmul %20, %21, %cst_19 {dimension_numbers = #tpu.dot_dimension_numbers<[1], [0], [0], [1], [0, 0, 1, 1], [], []>} : vector<8x128xf32>, vector<128x128xf32>, vector<8x128xf32> -> vector<8x128xf32>
    %c0_20 = arith.constant 0 : index
    %c0_21 = arith.constant 0 : index
    %23 = vector.load %arg9[%c0_20, %c0_21] : memref<1x128xf32, #tpu.memory_space<vmem>>, vector<1x128xf32>
    %24 = vector.broadcast %23 : vector<1x128xf32> to vector<8x128xf32>
    %25 = arith.addf %22, %24 : vector<8x128xf32>
    %c0_22 = arith.constant 0 : index
    %c0_23 = arith.constant 0 : index
    %26 = vector.load %arg10[%c0_22, %c0_23] : memref<8x128xf32, #tpu.memory_space<vmem>>, vector<8x128xf32>
    tpu.vector_store %arg10[%c0_22, %c0_23], %25 {strides = array<i32>} : memref<8x128xf32, #tpu.memory_space<vmem>>, vector<8x128xf32>,
    return
  }
  func.func @transform_0(%arg0: i32) -> (i32, i32) {
    %c0_i32 = arith.constant 0 : i32
    %c0_i32_0 = arith.constant 0 : i32
    return %arg0, %c0_i32 : i32, i32
  }
  func.func @transform_1(%arg0: i32) -> (i32, i32) {
    %c0_i32 = arith.constant 0 : i32
    %c0_i32_0 = arith.constant 0 : i32
    return %arg0, %c0_i32 : i32, i32
  }
  func.func @transform_2(%arg0: i32) -> (i32, i32) {
    %c0_i32 = arith.constant 0 : i32
    %c0_i32_0 = arith.constant 0 : i32
    %c0_i32_1 = arith.constant 0 : i32
    return %c0_i32, %c0_i32_0 : i32, i32
  }
  func.func @transform_3(%arg0: i32) -> (i32, i32) {
    %c0_i32 = arith.constant 0 : i32
    %c0_i32_0 = arith.constant 0 : i32
    %c0_i32_1 = arith.constant 0 : i32
    return %c0_i32, %c0_i32_0 : i32, i32
  }
  func.func @transform_4(%arg0: i32) -> (i32, i32) {
    %c0_i32 = arith.constant 0 : i32
    %c0_i32_0 = arith.constant 0 : i32
    %c0_i32_1 = arith.constant 0 : i32
    return %c0_i32, %c0_i32_0 : i32, i32
  }
  func.func @transform_5(%arg0: i32) -> (i32, i32) {
    %c0_i32 = arith.constant 0 : i32
    %c0_i32_0 = arith.constant 0 : i32
    %c0_i32_1 = arith.constant 0 : i32
    return %c0_i32, %c0_i32_0 : i32, i32
  }
  func.func @transform_6(%arg0: i32) -> (i32, i32) {
    %c0_i32 = arith.constant 0 : i32
    %c0_i32_0 = arith.constant 0 : i32
    %c0_i32_1 = arith.constant 0 : i32
    return %c0_i32, %c0_i32_0 : i32, i32
  }
  func.func @transform_7(%arg0: i32) -> (i32, i32) {
    %c0_i32 = arith.constant 0 : i32
    %c0_i32_0 = arith.constant 0 : i32
    %c0_i32_1 = arith.constant 0 : i32
    return %c0_i32, %c0_i32_0 : i32, i32
  }
  func.func @transform_8(%arg0: i32) -> (i32, i32) {
    %c0_i32 = arith.constant 0 : i32
    %c0_i32_0 = arith.constant 0 : i32
    %c0_i32_1 = arith.constant 0 : i32
    return %c0_i32, %c0_i32_0 : i32, i32
  }
  func.func @transform_9(%arg0: i32) -> (i32, i32) {
    %c0_i32 = arith.constant 0 : i32
    %c0_i32_0 = arith.constant 0 : i32
    return %arg0, %c0_i32 : i32, i32
  }
}

</mosaic_0001>

<bundles_post_ra>
// kernel: tpu_custom_call.1
= control target key start
LH: loop header
LB: loop body
LE: loop exit
PB: predicated region body
PF: predicated region fallthrough
CT: control target
= control target key end

     0   :  { %14 = vsyncpa [#allocation3], 0  ;;  %s1039_s0 = inlined_call_operand.hbm [shape: f32[8,16], index: 0, kind: input, shape index: {}]   ;;  %s1040_s1 = inlined_call_operand.hbm [shape: f32[8,18], index: 1, kind: input, shape index: {}]   ;;  %s1041_s2 = inlined_call_operand.hbm [shape: f32[16,128], index: 2, kind: input, shape index: {}]   ;;  %s1042_s3 = inlined_call_operand.hbm [shape: f32[18,128], index: 3, kind: input, shape index: {}]   ;;  %s1043_s4 = inlined_call_operand.vmem [shape: f32[1,128], index: 4, kind: input, shape index: {}]   ;;  %s1044_s5 = inlined_call_operand.hbm [shape: f32[128,128], index: 5, kind: input, shape index: {}]   ;;  %s1045_s6 = inlined_call_operand.vmem [shape: f32[1,128], index: 6, kind: input, shape index: {}]   ;;  %s1046_s7 = inlined_call_operand.hbm [shape: f32[128,128], index: 7, kind: input, shape index: {}]   ;;  %s1047_s8 = inlined_call_operand.vmem [shape: f32[1,128], index: 8, kind: input, shape index: {}]   ;;  %s1048_s9 = inlined_call_operand.hbm [shape: f32[8,128], index: 9, kind: output, shape index: {}]  }
   0x1   :  { %15 = vsyncpa [#allocation6], 0 }
   0x2   :  { %16 = vsyncpa [#allocation9], 0 }
   0x3   :  { %17 = vsyncpa [#allocation12], 0 }
   0x4   :  { %18 = vsyncpa [#allocation4], 0  ;;  %s850_s30 = smov [#allocation5]   ;;  %s686_s13 = scalar_lea.hbm %s1040_s1, 128 }
   0x5   :  { %s35_s10 = sshll.u32 %s850_s30, 4  ;;  %p687_p0 = scmp.ne.s32.totalorder %s1040_s1, %s686_s13  ;;  %s36_s10 = int_to_ptr.vmem [resolvable:$true] %s35_s10 }
   0x6   :  { %p690_p1 = scmp.lt.u32.totalorder %s686_s13, %s1040_s1 }
   0x8   :  { %p692_p2 = pnand %p690_p1, %p687_p0 }
   0xa   :  { %695 = shalt.err (!%p692_p2)
}
   0xb   :  { %s696_s18 = scalar_lea.vmem %s36_s10, 128  ;;  %p701_p4 = scmp.lt.s32.totalorder %s36_s10, %s36_s10 }
   0xc   :  { %p697_p3 = scmp.ne.s32.totalorder %s36_s10, %s696_s18  ;;  %p702_p5 = scmp.lt.s32.totalorder %s696_s18, %s696_s18 }
   0xe   :  { %p703_p6 = por %p702_p5, %p701_p4 }
  0x10   :  { %p704_p7 = pnand %p703_p6, %p697_p3 }
  0x12   :  { %707 = shalt.err (!%p704_p7)
}
  0x13   :  { %38 = dma.hbm_to_vmem [thread:$0]  %s1040_s1, 128, %s36_s10, [#allocation6]  }
  0x14   :  { %s851_s21 = smov [#allocation8]   ;;  %s852_s23 = smov [#allocation2]  }
  0x15   :  { %s56_s22 = sshll.u32 %s851_s21, 4  ;;  %s25_s24 = sshll.u32 %s852_s23, 4  ;;  %s57_s22 = int_to_ptr.vmem [resolvable:$true] %s56_s22  ;;  %s26_s24 = int_to_ptr.vmem [resolvable:$true] %s25_s24 }
  0x16   :  { %s708_s27 = scalar_lea.hbm %s1042_s3, 384 }
  0x17   :  { %p709_p8 = scmp.ne.s32.totalorder %s1042_s3, %s708_s27  ;;  %p712_p9 = scmp.lt.u32.totalorder %s708_s27, %s1042_s3 }
  0x19   :  { %p714_p10 = pnand %p712_p9, %p709_p8 }
  0x1b   :  { %717 = shalt.err (!%p714_p10)
}
  0x1c   :  { %s718_s1 = scalar_lea.vmem %s57_s22, 384  ;;  %p723_p12 = scmp.lt.s32.totalorder %s57_s22, %s57_s22 }
  0x1d   :  { %p719_p11 = scmp.ne.s32.totalorder %s57_s22, %s718_s1  ;;  %p724_p13 = scmp.lt.s32.totalorder %s718_s1, %s718_s1 }
  0x1f   :  { %p725_p0 = por %p724_p13, %p723_p12 }
  0x21   :  { %p726_p1 = pnand %p725_p0, %p719_p11 }
  0x23   :  { %729 = shalt.err (!%p726_p1)
}
  0x24   :  { %s853_s10 = smov 128   ;;  %s854_s12 = smov 8  }
  0x25   :  { %62 = dma.hbm_to_vmem [thread:$0]  %s1042_s3, 384, %s57_s22, [#allocation9], %s853_s10, %s853_s10, %s854_s12  }
  0x26   :  { %s730_s17 = scalar_lea.hbm %s1039_s0, 128 }
  0x27   :  { %p731_p2 = scmp.ne.s32.totalorder %s1039_s0, %s730_s17  ;;  %p734_p3 = scmp.lt.u32.totalorder %s730_s17, %s1039_s0 }
  0x29   :  { %p736_p4 = pnand %p734_p3, %p731_p2 }
  0x2b   :  { %739 = shalt.err (!%p736_p4)
}
  0x2c   :  { %s740_s23 = scalar_lea.vmem %s26_s24, 128  ;;  %p745_p6 = scmp.lt.s32.totalorder %s26_s24, %s26_s24 }
  0x2d   :  { %p741_p5 = scmp.ne.s32.totalorder %s26_s24, %s740_s23  ;;  %p746_p7 = scmp.lt.s32.totalorder %s740_s23, %s740_s23 }
  0x2f   :  { %p747_p8 = por %p746_p7, %p745_p6 }
  0x31   :  { %p748_p9 = pnand %p747_p8, %p741_p5 }
  0x33   :  { %751 = shalt.err (!%p748_p9)
}
  0x34   :  { %28 = dma.hbm_to_vmem [thread:$0]  %s1039_s0, 128, %s26_s24, [#allocation3]  }
  0x35   :  { %s855_s25 = smov [#allocation7]   ;;  %s856_s27 = smov [#allocation10]  }
  0x36   :  { %s44_s26 = sshll.u32 %s855_s25, 4  ;;  %s70_s28 = sshll.u32 %s856_s27, 4  ;;  %s45_s26 = int_to_ptr.vmem [resolvable:$true] %s44_s26  ;;  %s71_s28 = int_to_ptr.vmem [resolvable:$true] %s70_s28 }
  0x37   :  { %s752_s11 = scalar_lea.hbm %s1041_s2, 256 }
  0x38   :  { %p753_p10 = scmp.ne.s32.totalorder %s1041_s2, %s752_s11  ;;  %p756_p11 = scmp.lt.u32.totalorder %s752_s11, %s1041_s2 }
  0x3a   :  { %p758_p12 = pnand %p756_p11, %p753_p10 }
  0x3c   :  { %761 = shalt.err (!%p758_p12)
}
  0x3d   :  { %s762_s0 = scalar_lea.vmem %s45_s26, 256  ;;  %p767_p0 = scmp.lt.s32.totalorder %s45_s26, %s45_s26 }
  0x3e   :  { %p763_p13 = scmp.ne.s32.totalorder %s45_s26, %s762_s0  ;;  %p768_p1 = scmp.lt.s32.totalorder %s762_s0, %s762_s0 }
  0x40   :  { %p769_p2 = por %p768_p1, %p767_p0 }
  0x42   :  { %p770_p3 = pnand %p769_p2, %p763_p13 }
  0x44   :  { %773 = shalt.err (!%p770_p3)
}
  0x45   :  { %50 = dma.hbm_to_vmem [thread:$0]  %s1041_s2, 256, %s45_s26, [#allocation6], %s853_s10, %s853_s10, %s854_s12  }
  0x46   :  { %s774_s19 = scalar_lea.hbm %s1044_s5, 2048 }
  0x47   :  { %p775_p4 = scmp.ne.s32.totalorder %s1044_s5, %s774_s19  ;;  %p778_p5 = scmp.lt.u32.totalorder %s774_s19, %s1044_s5 }
  0x49   :  { %p780_p6 = pnand %p778_p5, %p775_p4 }
  0x4b   :  { %783 = shalt.err (!%p780_p6)
}
  0x4c   :  { %s784_s22 = scalar_lea.vmem %s71_s28, 2048  ;;  %p789_p8 = scmp.lt.s32.totalorder %s71_s28, %s71_s28 }
  0x4d   :  { %p785_p7 = scmp.ne.s32.totalorder %s71_s28, %s784_s22  ;;  %p790_p9 = scmp.lt.s32.totalorder %s784_s22, %s784_s22 }
  0x4f   :  { %p791_p10 = por %p790_p9, %p789_p8 }
  0x51   :  { %p792_p11 = pnand %p791_p10, %p785_p7 }
  0x53   :  { %795 = shalt.err (!%p792_p11)
}
  0x54   :  { %76 = dma.hbm_to_vmem [thread:$0]  %s1044_s5, 2048, %s71_s28, [#allocation9], %s853_s10, %s853_s10, %s854_s12  }
  0x55   :  { %s857_s26 = smov [#allocation11]   ;;  %s796_s11 = scalar_lea.hbm %s1046_s7, 2048 }
  0x56   :  { %s84_s27 = sshll.u32 %s857_s26, 4  ;;  %p797_p12 = scmp.ne.s32.totalorder %s1046_s7, %s796_s11  ;;  %s85_s27 = int_to_ptr.vmem [resolvable:$true] %s84_s27 }
  0x57   :  { %p800_p13 = scmp.lt.u32.totalorder %s796_s11, %s1046_s7 }
  0x59   :  { %p802_p0 = pnand %p800_p13, %p797_p12 }
  0x5b   :  { %805 = shalt.err (!%p802_p0)
}
  0x5c   :  { %s806_s0 = scalar_lea.vmem %s85_s27, 2048  ;;  %p811_p2 = scmp.lt.s32.totalorder %s85_s27, %s85_s27 }
  0x5d   :  { %p807_p1 = scmp.ne.s32.totalorder %s85_s27, %s806_s0  ;;  %p812_p3 = scmp.lt.s32.totalorder %s806_s0, %s806_s0 }
  0x5f   :  { %p813_p4 = por %p812_p3, %p811_p2 }
  0x61   :  { %p814_p5 = pnand %p813_p4, %p807_p1 }
  0x63   :  { %817 = shalt.err (!%p814_p5)
}
  0x64   :  { %90 = dma.hbm_to_vmem [thread:$0]  %s1046_s7, 2048, %s85_s27, [#allocation12], %s853_s10, %s853_s10, %s854_s12  }
  0x65   :  { %840 = dma.done.wait [#allocation3], 128  }
  0x66   :  { %841 = vsyncadd [#allocation3], 4294967168 }
  0x67   :  { %842 = dma.done.wait [#allocation6], 384  }
  0x68   :  { %843 = vsyncadd [#allocation6], 4294966912 }
  0x69   :  { %844 = dma.done.wait [#allocation9], 2432  }
  0x6a   :  { %845 = vsyncadd [#allocation9], 4294964864 }
  0x6b   :  { %846 = dma.done.wait [#allocation12], 2048  }
  0x6c   :  { %847 = vsyncadd [#allocation12], 4294965248  ;;  %v858_v0 = vmov 0.0|0.0   ;;  %vm859_vm0 = vmmov 0   ;;  %v860_v1 = vmov 0.0   ;;  %v115_v2 = vld [vmem:[#allocation8] sm:$0xff] }
  0x6d   :  { %620 = vmatprep.subr.bf16.mxu0 %v858_v0  ;;  %623 = vmatprep.subr.bf16.mxu1 %v858_v0  ;;  %v116_v3 = vld [vmem:[#allocation8 + $0x8] sm:$0xff]  ;;  %v112_v4 = vld [vmem:[#allocation7] sm:$0xff]  ;;  %v113_v6 = vld [vmem:[#allocation7 + $0x8] sm:$0xff]  ;;  %vm122_vm1 = vcmask 1041408   ;;  %vm196_vm2 = vcmask 130048   ;;  %vm118_vm3 = vcmask 146432  }
  0x6e   :  { %547 = vmatprep.mubr.msk.f32.mxu1 %vm859_vm0, %v860_v1  ;;  %540 = vmatprep.mubr.msk.f32.mxu0 %vm859_vm0, %v860_v1  ;;  %v621_v5 = vpack.c.bf16 %v116_v3, %v115_v2  ;;  %v624_v7 = vpack.c.bf16 %v113_v6, %v112_v4  ;;  %v280_v8 = vld [vmem:[#allocation10] sm:$0xff]  ;;  %v281_v9 = vld [vmem:[#allocation10 + $0x8] sm:$0xff]  ;;  %v117_v10 = vld [vmem:[#allocation8 + $0x10] sm:$0x3]  ;;  %s861_s17 = smov [#allocation13]  }
  0x6f   :  { %v111_v11 = vld [vmem:[#allocation2] sm:$0xff]  ;;  %v627_v12 = vpack.c.bf16 %v281_v9, %v280_v8  ;;  %v114_v13 = vld [vmem:[#allocation5] sm:$0xff]  ;;  %v283_v15 = vld [vmem:[#allocation10 + $0x18] sm:$0xff]  ;;  %s475_s18 = sshll.u32 %s861_s17, 4  ;;  %s476_s18 = int_to_ptr.vmem [resolvable:$true] %s475_s18 }
  0x70   :  { %622 = vmatpush3.bf16.msra.mxu0 %v621_v5  ;;  %625 = vmatpush3.bf16.msra.mxu1 %v624_v7  ;;  %v282_v14 = vld [vmem:[#allocation10 + $0x10] sm:$0xff]  ;;  %v284_v17 = vld [vmem:[#allocation10 + $0x20] sm:$0xff]  ;;  %v285_v18 = vld [vmem:[#allocation10 + $0x28] sm:$0xff]  ;;  %s818_s19 = scalar_lea.vmem %s476_s18, 128  ;;  %p823_p7 = scmp.lt.s32.totalorder %s476_s18, %s476_s18 }
  0x71   :  { %538 = vmatprep.subr.mxu0 %v860_v1  ;;  %626 = vmatprep.subr.bf16.mxu1 %v858_v0  ;;  %v630_v16 = vpack.c.bf16 %v283_v15, %v282_v14  ;;  %v633_v19 = vpack.c.bf16 %v285_v18, %v284_v17  ;;  %v286_v20 = vld [vmem:[#allocation10 + $0x30] sm:$0xff]  ;;  %v287_v21 = vld [vmem:[#allocation10 + $0x38] sm:$0xff]  ;;  %v288_v23 = vld [vmem:[#allocation10 + $0x40] sm:$0xff]  ;;  %p819_p6 = scmp.ne.s32.totalorder %s476_s18, %s818_s19  ;;  %p824_p8 = scmp.lt.s32.totalorder %s818_s19, %s818_s19 }
  0x72   :  { %v636_v22 = vpack.c.bf16 %v287_v21, %v286_v20  ;;  %v289_v24 = vld [vmem:[#allocation10 + $0x48] sm:$0xff]  ;;  %v290_v26 = vld [vmem:[#allocation10 + $0x50] sm:$0xff]  ;;  %v291_v27 = vld [vmem:[#allocation10 + $0x58] sm:$0xff] }
  0x73   :  { %548 = vmatmul.mubr.msk.f32.vlgmr.msra.gmra.mrb[0].mxu1 %vm196_vm2, %v111_v11  ;;  %v639_v25 = vpack.c.bf16 %v289_v24, %v288_v23  ;;  %v642_v28 = vpack.c.bf16 %v291_v27, %v290_v26  ;;  %v292_v29 = vld [vmem:[#allocation10 + $0x60] sm:$0xff]  ;;  %v293_v30 = vld [vmem:[#allocation10 + $0x68] sm:$0xff]  ;;  %v294_v32 = vld [vmem:[#allocation10 + $0x70] sm:$0xff]  ;;  %p825_p9 = por %p824_p8, %p823_p7 }
  0x74   :  { %539 = vmatpush3.msk.msra.mxu0 %vm122_vm1, %v117_v10  ;;  %628 = vmatpush3.bf16.msra.mxu1 %v627_v12  ;;  %v645_v31 = vpack.c.bf16 %v293_v30, %v292_v29  ;;  %v295_v33 = vld [vmem:[#allocation10 + $0x78] sm:$0xff]  ;;  %v375_v35 = vld [vmem:[#allocation11] sm:$0xff]  ;;  %v376_v36 = vld [vmem:[#allocation11 + $0x8] sm:$0xff] }
  0x75   :  { %541 = vmatmul.mubr.msk.f32.vlgmr.msra.gmra.mrb[0].mxu0 %vm118_vm3, %v114_v13  ;;  %629 = vmatprep.subr.bf16.mxu1 %v858_v0  ;;  %v648_v34 = vpack.c.bf16 %v295_v33, %v294_v32  ;;  %v377_v37 = vld [vmem:[#allocation11 + $0x10] sm:$0xff]  ;;  %v651_v38 = vpack.c.bf16 %v376_v36, %v375_v35  ;;  %v378_v39 = vld [vmem:[#allocation11 + $0x18] sm:$0xff]  ;;  %v379_v41 = vld [vmem:[#allocation11 + $0x20] sm:$0xff]  ;;  %p826_p10 = pnand %p825_p9, %p819_p6 }
  0x76   :  { %582 = vmatprep.mubr.msk.f32.mxu1 %vm859_vm0, %v860_v1  ;;  %650 = vmatprep.subr.bf16.mxu0 %v858_v0  ;;  %v654_v40 = vpack.c.bf16 %v378_v39, %v377_v37  ;;  %v380_v42 = vld [vmem:[#allocation11 + $0x28] sm:$0xff]  ;;  %v381_v44 = vld [vmem:[#allocation11 + $0x30] sm:$0xff]  ;;  %v382_v45 = vld [vmem:[#allocation11 + $0x38] sm:$0xff] }
  0x77   :  { %617 = vmatprep.mubr.msk.f32.mxu0 %vm859_vm0, %v860_v1  ;;  %652 = vmatpush3.bf16.msra.mxu0 %v651_v38  ;;  %v657_v43 = vpack.c.bf16 %v380_v42, %v379_v41  ;;  %v660_v46 = vpack.c.bf16 %v382_v45, %v381_v44  ;;  %v383_v47 = vld [vmem:[#allocation11 + $0x40] sm:$0xff]  ;;  %v384_v48 = vld [vmem:[#allocation11 + $0x48] sm:$0xff]  ;;  %v385_v50 = vld [vmem:[#allocation11 + $0x50] sm:$0xff] }
  0x78   :  { %631 = vmatpush3.bf16.msra.mxu1 %v630_v16  ;;  %653 = vmatprep.subr.bf16.mxu0 %v858_v0  ;;  %v663_v49 = vpack.c.bf16 %v384_v48, %v383_v47  ;;  %v386_v51 = vld [vmem:[#allocation11 + $0x58] sm:$0xff]  ;;  %v490_v55 = vld [vmem:[%s1043_s4] ss:$0 sm:$0xff]  ;;  %v387_v62 = vld [vmem:[#allocation11 + $0x60] sm:$0xff] }
  0x79   :  { %632 = vmatprep.subr.bf16.mxu1 %v858_v0  ;;  %v666_v52 = vpack.c.bf16 %v386_v51, %v385_v50  ;;  %v388_v63 = vld [vmem:[#allocation11 + $0x68] sm:$0xff]  ;;  %v389_v2 = vld [vmem:[#allocation11 + $0x70] sm:$0xff]  ;;  %v390_v3 = vld [vmem:[#allocation11 + $0x78] sm:$0xff] }
  0x7a   :  { %v669_v1 = vpack.c.bf16 %v388_v63, %v387_v62  ;;  %v672_v4 = vpack.c.bf16 %v390_v3, %v389_v2  ;;  %v491_v5 = vld [vmem:[%s1045_s6] ss:$0 sm:$0xff] }
  0x7b   :  { %655 = vmatpush3.bf16.msra.mxu0 %v654_v40  ;;  %v492_v11 = vld [vmem:[%s1047_s8] ss:$0 sm:$0xff] }
  0x7c   :  { %634 = vmatpush3.bf16.msra.mxu1 %v633_v19  ;;  %656 = vmatprep.subr.bf16.mxu0 %v858_v0 }
  0x7d   :  { %635 = vmatprep.subr.bf16.mxu1 %v858_v0 }
  0x7f   :  { %658 = vmatpush3.bf16.msra.mxu0 %v657_v43 }
  0x80   :  { %637 = vmatpush3.bf16.msra.mxu1 %v636_v22  ;;  %659 = vmatprep.subr.bf16.mxu0 %v858_v0 }
  0x81   :  { %638 = vmatprep.subr.bf16.mxu1 %v858_v0 }
  0x83   :  { %661 = vmatpush3.bf16.msra.mxu0 %v660_v46 }
  0x84   :  { %640 = vmatpush3.bf16.msra.mxu1 %v639_v25  ;;  %662 = vmatprep.subr.bf16.mxu0 %v858_v0 }
  0x85   :  { %641 = vmatprep.subr.bf16.mxu1 %v858_v0 }
  0x87   :  { %664 = vmatpush3.bf16.msra.mxu0 %v663_v49 }
  0x88   :  { %643 = vmatpush3.bf16.msra.mxu1 %v642_v28  ;;  %665 = vmatprep.subr.bf16.mxu0 %v858_v0 }
  0x89   :  { %644 = vmatprep.subr.bf16.mxu1 %v858_v0 }
  0x8b   :  { %667 = vmatpush3.bf16.msra.mxu0 %v666_v52 }
  0x8c   :  { %646 = vmatpush3.bf16.msra.mxu1 %v645_v31  ;;  %668 = vmatprep.subr.bf16.mxu0 %v858_v0 }
  0x8d   :  { %647 = vmatprep.subr.bf16.mxu1 %v858_v0 }
  0x8f   :  { %670 = vmatpush3.bf16.msra.mxu0 %v669_v1 }
  0x90   :  { %649 = vmatpush3.bf16.msra.mxu1 %v648_v34  ;;  %671 = vmatprep.subr.bf16.mxu0 %v858_v0 }
  0x93   :  { %673 = vmatpush3.bf16.msra.mxu0 %v672_v4 }
 0x146   :  { %v266_v53 = vpop.f32.mrb[0].mxu1 }
 0x147   :  { %v549_v56 = vpop.f32.mrb[1].mxu1 }
 0x148   :  { %v192_v54 = vpop.f32.mrb[0].mxu0 }
 0x149   :  { %v267_v57 = vadd.f32 %v266_v53, %v192_v54  ;;  %v542_v58 = vpop.f32.mrb[1].mxu0 }
 0x14b   :  { %v277_v59 = vadd.f32 %v490_v55, %v267_v57 }
 0x14d   :  { %v278_v60 = vmul.f32 0.01, %v277_v59 }
 0x14f   :  { %v279_v61 = vmax.f32 %v277_v59, %v278_v60 }
 0x151   :  { %583 = vmatmul.mubr.f32.vlgmr.msra.gmra.mrb[2].mxu1 %v279_v61 }
 0x224   :  { %v369_v6 = vpop.f32.mrb[2].mxu1 }
 0x225   :  { %v370_v7 = vadd.f32 %v491_v5, %v369_v6  ;;  %v584_v8 = vpop.f32.mrb[3].mxu1 }
 0x227   :  { %v373_v9 = vmul.f32 0.01, %v370_v7 }
 0x229   :  { %v374_v10 = vmax.f32 %v370_v7, %v373_v9 }
 0x22b   :  { %618 = vmatmul.mubr.f32.vlgmr.msra.gmra.mrb[2].mxu0 %v374_v10 }
 0x2fe   :  { %v464_v0 = vpop.f32.mrb[2].mxu0 }
 0x2ff   :  { %v465_v12 = vadd.f32 %v492_v11, %v464_v0  ;;  %v619_v13 = vpop.f32.mrb[3].mxu0 }
 0x301   :  { %468 = vst [vmem:[#allocation13] sm:$0xff] %v465_v12 }
 0x302   :  { %829 = shalt.err (!%p826_p10)
}
 0x303   :  { %s830_s21 = scalar_lea.hbm %s1048_s9, 128 }
 0x304   :  { %p831_p11 = scmp.ne.s32.totalorder %s1048_s9, %s830_s21  ;;  %p834_p12 = scmp.lt.u32.totalorder %s830_s21, %s1048_s9 }
 0x306   :  { %p836_p13 = pnand %p834_p12, %p831_p11 }
 0x308   :  { %839 = shalt.err (!%p836_p13)
}
 0x309   :  { %478 = dma.vmem_to_hbm [thread:$0]  %s476_s18, 128, %s1048_s9, [#allocation4]  }
 0x30a   :  { %848 = dma.done.wait [#allocation4], 128  }
 0x30b   :  { %849 = vsyncadd [#allocation4], 4294967168 }
 0x30c   :  { %482 = vsyncpa [#allocation3], 1 }
 0x30d   :  { %483 = vsyncpa [#allocation6], 1 }
 0x30e   :  { %484 = vsyncpa [#allocation9], 1 }
 0x30f   :  { %485 = vsyncpa [#allocation12], 1 }
 0x310   :  { %486 = vsyncpa [#allocation4], 1 }

</bundles_post_ra>
